<compile_context>
chip_gen: v6e
topology: v6e:2x2x1
jax: 0.10.0
libtpu: 0.0.40
codegen_flags: <defaults>
</compile_context>

<pallas_src>
import functools
import math

import jax
import jax.numpy as jnp
from jax.experimental import pallas as pl
from jax.experimental.pallas import tpu as pltpu


def _rff_kernel(x_ref, freqs_ref, bias_ref, out_ref, *, nf, include_input):
    # x_ref:     (b_tile, d_in)
    # freqs_ref: (1, nf*d_in)  == freqs.T flattened row-major over (f, d)
    # bias_ref:  (1, nf*d_in)  == biases broadcast over d_in, flattened
    x = x_ref[...].astype(jnp.float32)                        # (bt, d_in)
    # In-register replication along the lane axis: column k = f*d_in + d -> x[:, d].
    x_rep = jnp.concatenate([x] * nf, axis=-1)                # (bt, nf*d_in)
    projected = x_rep * freqs_ref[...] + bias_ref[...]        # addcmul, exact f32
    cos_enc = jnp.sqrt(jnp.float32(2.0)) * jnp.cos(projected)
    if include_input:
        full = jnp.concatenate([x, cos_enc], axis=-1)         # (bt, d_out)
    else:
        full = cos_enc
    out_ref[...] = full.astype(out_ref.dtype)                 # single full-row store


def rff_encoding(x, freqs, biases, *, include_input=True, out_dtype=None,
                 b_tile=2048):
    """Pallas implementation of RFFEncoding.forward.

    x:      (B, d_in) float32
    freqs:  (d_in, NF) float32   (NF = 2 * num_freqs)
    biases: (NF,)      float32
    returns (B, d_out) with d_out = d_in*NF (+ d_in if include_input)
    """
    B, d_in = x.shape
    d_in_f, nf = freqs.shape
    assert d_in_f == d_in and biases.shape == (nf,)
    d_enc = d_in * nf
    d_out = d_enc + (d_in if include_input else 0)
    out_dtype = x.dtype if out_dtype is None else out_dtype

    # Tiny, lane-aligned constants built once in plain JAX (layout glue only):
    # flat index k = f*d_in + d  ->  freqs[d, f], biases[f].
    freqs_flat = freqs.T.reshape(1, d_enc).astype(jnp.float32)
    bias_flat = jnp.broadcast_to(
        biases.astype(jnp.float32)[:, None], (nf, d_in)).reshape(1, d_enc)

    # Batch tile: large (amortizes ~0.35us/step grid overhead), multiple of 8,
    # never bigger than the batch itself. Last block may be ragged (Pallas
    # pads the read and drops out-of-bounds writes).
    if B <= 8:
        bt = B
    else:
        bt = max(8, min(int(b_tile), (B // 8) * 8))
    grid = (pl.cdiv(B, bt),)

    kernel = functools.partial(_rff_kernel, nf=nf, include_input=include_input)

    return pl.pallas_call(
        kernel,
        out_shape=jax.ShapeDtypeStruct((B, d_out), out_dtype),
        grid_spec=pltpu.PrefetchScalarGridSpec(
            num_scalar_prefetch=0,
            grid=grid,
            in_specs=[
                pl.BlockSpec((bt, d_in), lambda i: (i, 0)),
                pl.BlockSpec((1, d_enc), lambda i: (0, 0)),
                pl.BlockSpec((1, d_enc), lambda i: (0, 0)),
            ],
            out_specs=pl.BlockSpec((bt, d_out), lambda i: (i, 0)),
        ),
        compiler_params=pltpu.CompilerParams(
            dimension_semantics=("parallel",),
        ),
    )(x, freqs_flat, bias_flat)


def rff_encoding_ref(x, freqs, biases, *, include_input=True):
    """Pure-JAX reference mirroring the PyTorch forward exactly."""
    B, d_in = x.shape
    nf = biases.shape[0]
    embed = jnp.broadcast_to(x[:, None, :], (B, nf, d_in))     # (B, NF, d_in)
    projected = biases[None, :, None] + embed * freqs.T[None, :, :]
    cos_enc = jnp.sqrt(jnp.float32(2.0)) * jnp.cos(projected)
    cos_enc = cos_enc.reshape(B, -1)
    if include_input:
        return jnp.concatenate([x, cos_enc], axis=-1)
    return cos_enc


if __name__ == "__main__":
    # Module defaults: num_freqs=6 -> NF = 12, d_in=3, sigma=1.0, include_input=True
    num_freqs = 6
    nf = 2 * num_freqs
    d_in = 3
    sigma = 1.0

    key = jax.random.PRNGKey(0)
    k_freq, k_bias, k_x = jax.random.split(key, 3)

    # Deterministic, in-script parameter init matching __init__ semantics.
    freqs = (2.0 * math.pi) * jax.random.normal(k_freq, (d_in, nf), dtype=jnp.float32) * sigma
    biases = (2.0 * math.pi) * jax.random.uniform(k_bias, (nf,), dtype=jnp.float32)

    # Two small deterministic batches: one sublane-aligned, one ragged (B not a
    # multiple of the batch tile) to exercise the cdiv / padded-last-block path.
    for B in (32, 20):
        x = jax.random.normal(jax.random.fold_in(k_x, B), (B, d_in), dtype=jnp.float32)
        out = jax.block_until_ready(rff_encoding(x, freqs, biases, include_input=True))
        ref = rff_encoding_ref(x, freqs, biases, include_input=True)
        assert out.shape == (B, d_in + d_in * nf), out.shape
        assert jnp.allclose(out, ref, atol=1e-5, rtol=1e-5), f"mismatch vs reference (B={B})"

    print("KERNEL_OK")
</pallas_src>

<mosaic_0001>
module attributes {stable_mosaic.version = 11 : i64} {
  func.func @_rff_kernel(%arg0: i32, %arg1: memref<32x3xf32, #tpu.memory_space<vmem>>, %arg2: memref<1x36xf32, #tpu.memory_space<vmem>>, %arg3: memref<1x36xf32, #tpu.memory_space<vmem>>, %arg4: memref<32x39xf32, #tpu.memory_space<vmem>>) attributes {dimension_semantics = [#tpu.dimension_semantics<parallel>], iteration_bounds = array<i64: 1>, scalar_prefetch = 0 : i64, scratch_operands = 0 : i64, tpu.core_type = #tpu.core_type<tc>, window_params = [{transform_indices = @transform_0, window_bounds = array<i64: 32, 3>}, {pipeline_mode = #tpu.pipeline_mode<synchronous>, transform_indices = @transform_1, window_bounds = array<i64: 1, 36>}, {pipeline_mode = #tpu.pipeline_mode<synchronous>, transform_indices = @transform_2, window_bounds = array<i64: 1, 36>}, {transform_indices = @transform_3, window_bounds = array<i64: 32, 39>}]} {
    %c0 = arith.constant 0 : index
    %c0_0 = arith.constant 0 : index
    %0 = vector.load %arg1[%c0, %c0_0] : memref<32x3xf32, #tpu.memory_space<vmem>>, vector<32x3xf32>
    %1 = tpu.concatenate %0, %0, %0, %0, %0, %0, %0, %0, %0, %0, %0, %0 in 1 : vector<32x3xf32>, vector<32x3xf32>, vector<32x3xf32>, vector<32x3xf32>, vector<32x3xf32>, vector<32x3xf32>, vector<32x3xf32>, vector<32x3xf32>, vector<32x3xf32>, vector<32x3xf32>, vector<32x3xf32>, vector<32x3xf32> -> vector<32x36xf32>
    %c0_1 = arith.constant 0 : index
    %c0_2 = arith.constant 0 : index
    %2 = vector.load %arg2[%c0_1, %c0_2] : memref<1x36xf32, #tpu.memory_space<vmem>>, vector<1x36xf32>
    %3 = vector.broadcast %2 : vector<1x36xf32> to vector<32x36xf32>
    %4 = arith.mulf %1, %3 : vector<32x36xf32>
    %c0_3 = arith.constant 0 : index
    %c0_4 = arith.constant 0 : index
    %5 = vector.load %arg3[%c0_3, %c0_4] : memref<1x36xf32, #tpu.memory_space<vmem>>, vector<1x36xf32>
    %6 = vector.broadcast %5 : vector<1x36xf32> to vector<32x36xf32>
    %7 = arith.addf %4, %6 : vector<32x36xf32>
    %cst = arith.constant 2.000000e+00 : f32
    %8 = math.sqrt %cst : f32
    %9 = math.cos %7 : vector<32x36xf32>
    %10 = vector.broadcast %8 : f32 to vector<32x36xf32>
    %11 = arith.mulf %10, %9 : vector<32x36xf32>
    %12 = tpu.concatenate %0, %11 in 1 : vector<32x3xf32>, vector<32x36xf32> -> vector<32x39xf32>
    %c0_5 = arith.constant 0 : index
    %c0_6 = arith.constant 0 : index
    %13 = vector.load %arg4[%c0_5, %c0_6] : memref<32x39xf32, #tpu.memory_space<vmem>>, vector<32x39xf32>
    tpu.vector_store %arg4[%c0_5, %c0_6], %12 {strides = array<i32>} : memref<32x39xf32, #tpu.memory_space<vmem>>, vector<32x39xf32>,
    return
  }
  func.func @transform_0(%arg0: i32) -> (i32, i32) {
    %c0_i32 = arith.constant 0 : i32
    %c0_i32_0 = arith.constant 0 : i32
    return %arg0, %c0_i32 : i32, i32
  }
  func.func @transform_1(%arg0: i32) -> (i32, i32) {
    %c0_i32 = arith.constant 0 : i32
    %c0_i32_0 = arith.constant 0 : i32
    %c0_i32_1 = arith.constant 0 : i32
    return %c0_i32, %c0_i32_0 : i32, i32
  }
  func.func @transform_2(%arg0: i32) -> (i32, i32) {
    %c0_i32 = arith.constant 0 : i32
    %c0_i32_0 = arith.constant 0 : i32
    %c0_i32_1 = arith.constant 0 : i32
    return %c0_i32, %c0_i32_0 : i32, i32
  }
  func.func @transform_3(%arg0: i32) -> (i32, i32) {
    %c0_i32 = arith.constant 0 : i32
    %c0_i32_0 = arith.constant 0 : i32
    return %arg0, %c0_i32 : i32, i32
  }
}

</mosaic_0001>

<bundles_post_ra>
// kernel: tpu_custom_call.1
= control target key start
LH: loop header
LB: loop body
LE: loop exit
PB: predicated region body
PF: predicated region fallthrough
CT: control target
= control target key end

     0   :  { %s785_s16 = smov 3   ;;  %s1337_s0 = inlined_call_operand.vmem [shape: f32[32,3], index: 0, kind: input, shape index: {}]   ;;  %s1338_s1 = inlined_call_operand.vmem [shape: f32[1,36], index: 1, kind: input, shape index: {}]   ;;  %s1339_s2 = inlined_call_operand.vmem [shape: f32[1,36], index: 2, kind: input, shape index: {}]   ;;  %s1340_s3 = inlined_call_operand.hbm [shape: f32[32,39], index: 3, kind: output, shape index: {}]  }
   0x1   :  { %v828_v0 = vld [vmem:[%s1337_s0 + $0x10] sm:$0xff]  ;;  %v833_v1 = vld [vmem:[%s1337_s0] sm:$0xff]  ;;  %v842_v2 = vld [vmem:[%s1337_s0 + $0x18] sm:$0xff] }
   0x2   :  { %27 = vrot.lane.b32.xlu1 %v828_v0, %s785_s16  ;;  %23 = vrot.lane.b32.xlu0 %v833_v1, %s785_s16  ;;  %v847_v3 = vld [vmem:[%s1337_s0 + $0x8] sm:$0xff] }
   0x3   :  { %8 = vsyncpa [#allocation3], 0  ;;  %s786_s21 = smov 6   ;;  %s787_s22 = smov 9   ;;  %vm155_vm0 = vcmask 23552   ;;  %vm160_vm1 = vcmask 48128  }
   0x4   :  { %s788_s23 = smov 12   ;;  %s789_s24 = smov 15   ;;  %vm165_vm2 = vcmask 72704   ;;  %vm170_vm3 = vcmask 97280   ;;  %vm175_vm4 = vcmask 121856   ;;  %vm180_vm5 = vcmask 146432  }
   0x5   :  { %s790_s25 = smov 18   ;;  %s791_s26 = smov 21   ;;  %vm185_vm6 = vcmask 171008   ;;  %vm190_vm7 = vcmask 195584   ;;  %vm195_vm8 = vcmask 220160   ;;  %vm200_vm9 = vcmask 244736  }
   0x6   :  { %29 = vrot.lane.b32.xlu1 %v842_v2, %s785_s16  ;;  %25 = vrot.lane.b32.xlu0 %v847_v3, %s785_s16  ;;  %s792_s27 = smov 24   ;;  %s793_s28 = smov 27   ;;  %vm205_vm10 = vcmask 269312  }
   0x7   :  { %s794_s29 = smov 30   ;;  %s795_s30 = smov 33  }
   0x8   :  { %s802_s12 = smov [#allocation2]  }
   0x9   :  { %s678_s13 = sshll.u32 %s802_s12, 4  ;;  %s679_s13 = int_to_ptr.vmem [resolvable:$true] %s678_s13 }
   0xa   :  { %37 = vrot.lane.b32.xlu1 %v847_v3, %s786_s21  ;;  %35 = vrot.lane.b32.xlu0 %v833_v1, %s786_s21  ;;  %p768_p1 = scmp.lt.s32.totalorder %s679_s13, %s679_s13 }
   0xe   :  { %41 = vrot.lane.b32.xlu1 %v842_v2, %s786_s21  ;;  %39 = vrot.lane.b32.xlu0 %v828_v0, %s786_s21 }
  0x12   :  { %49 = vrot.lane.b32.xlu1 %v847_v3, %s787_s22  ;;  %47 = vrot.lane.b32.xlu0 %v833_v1, %s787_s22 }
  0x16   :  { %53 = vrot.lane.b32.xlu1 %v842_v2, %s787_s22  ;;  %51 = vrot.lane.b32.xlu0 %v828_v0, %s787_s22 }
  0x1a   :  { %61 = vrot.lane.b32.xlu1 %v847_v3, %s788_s23  ;;  %59 = vrot.lane.b32.xlu0 %v833_v1, %s788_s23 }
  0x1e   :  { %65 = vrot.lane.b32.xlu1 %v842_v2, %s788_s23  ;;  %63 = vrot.lane.b32.xlu0 %v828_v0, %s788_s23 }
  0x22   :  { %73 = vrot.lane.b32.xlu1 %v847_v3, %s789_s24  ;;  %71 = vrot.lane.b32.xlu0 %v833_v1, %s789_s24 }
  0x26   :  { %77 = vrot.lane.b32.xlu1 %v842_v2, %s789_s24  ;;  %75 = vrot.lane.b32.xlu0 %v828_v0, %s789_s24 }
  0x2a   :  { %85 = vrot.lane.b32.xlu1 %v847_v3, %s790_s25  ;;  %83 = vrot.lane.b32.xlu0 %v833_v1, %s790_s25 }
  0x2e   :  { %89 = vrot.lane.b32.xlu1 %v842_v2, %s790_s25  ;;  %87 = vrot.lane.b32.xlu0 %v828_v0, %s790_s25 }
  0x32   :  { %97 = vrot.lane.b32.xlu1 %v847_v3, %s791_s26  ;;  %95 = vrot.lane.b32.xlu0 %v833_v1, %s791_s26 }
  0x36   :  { %101 = vrot.lane.b32.xlu1 %v842_v2, %s791_s26  ;;  %99 = vrot.lane.b32.xlu0 %v828_v0, %s791_s26 }
  0x3a   :  { %109 = vrot.lane.b32.xlu1 %v847_v3, %s792_s27  ;;  %107 = vrot.lane.b32.xlu0 %v833_v1, %s792_s27 }
  0x3e   :  { %113 = vrot.lane.b32.xlu1 %v842_v2, %s792_s27  ;;  %111 = vrot.lane.b32.xlu0 %v828_v0, %s792_s27 }
  0x42   :  { %121 = vrot.lane.b32.xlu1 %v847_v3, %s793_s28  ;;  %119 = vrot.lane.b32.xlu0 %v833_v1, %s793_s28 }
  0x46   :  { %125 = vrot.lane.b32.xlu1 %v842_v2, %s793_s28  ;;  %123 = vrot.lane.b32.xlu0 %v828_v0, %s793_s28 }
  0x4a   :  { %133 = vrot.lane.b32.xlu1 %v847_v3, %s794_s29  ;;  %131 = vrot.lane.b32.xlu0 %v833_v1, %s794_s29 }
  0x4e   :  { %137 = vrot.lane.b32.xlu1 %v842_v2, %s794_s29  ;;  %135 = vrot.lane.b32.xlu0 %v828_v0, %s794_s29 }
  0x52   :  { %145 = vrot.lane.b32.xlu1 %v847_v3, %s795_s30  ;;  %143 = vrot.lane.b32.xlu0 %v833_v1, %s795_s30 }
  0x56   :  { %149 = vrot.lane.b32.xlu1 %v842_v2, %s795_s30  ;;  %147 = vrot.lane.b32.xlu0 %v828_v0, %s795_s30 }
  0x74   :  { %v28_v4 = vpop.permute.xlu1 %27  ;;  %v24_v5 = vpop.permute.xlu0 %23 }
  0x75   :  { %v158_v10 = vsel %vm155_vm0, %v828_v0, %v28_v4  ;;  %v156_v49 = vsel %vm155_vm0, %v833_v1, %v24_v5 }
  0x78   :  { %v30_v6 = vpop.permute.xlu1 %29  ;;  %v26_v7 = vpop.permute.xlu0 %25 }
  0x79   :  { %v159_v11 = vsel %vm155_vm0, %v842_v2, %v30_v6  ;;  %v157_v50 = vsel %vm155_vm0, %v847_v3, %v26_v7 }
  0x7c   :  { %v38_v8 = vpop.permute.xlu1 %37  ;;  %v36_v9 = vpop.permute.xlu0 %35 }
  0x7d   :  { %v162_v51 = vsel %vm160_vm1, %v157_v50, %v38_v8  ;;  %v161_v52 = vsel %vm160_vm1, %v156_v49, %v36_v9  ;;  %v689_v9 = vld [vmem:[%s1338_s1] ss:$0 sm:$0xff] }
  0x80   :  { %v42_v12 = vpop.permute.xlu1 %41  ;;  %v40_v13 = vpop.permute.xlu0 %39 }
  0x81   :  { %v164_v14 = vsel %vm160_vm1, %v159_v11, %v42_v12  ;;  %v163_v15 = vsel %vm160_vm1, %v158_v10, %v40_v13 }
  0x84   :  { %v50_v16 = vpop.permute.xlu1 %49  ;;  %v48_v17 = vpop.permute.xlu0 %47 }
  0x85   :  { %v167_v55 = vsel %vm165_vm2, %v162_v51, %v50_v16  ;;  %v166_v56 = vsel %vm165_vm2, %v161_v52, %v48_v17  ;;  %v690_v17 = vld [vmem:[%s1339_s2] ss:$0 sm:$0xff] }
  0x88   :  { %v54_v18 = vpop.permute.xlu1 %53  ;;  %v52_v19 = vpop.permute.xlu0 %51 }
  0x89   :  { %v169_v20 = vsel %vm165_vm2, %v164_v14, %v54_v18  ;;  %v168_v21 = vsel %vm165_vm2, %v163_v15, %v52_v19 }
  0x8c   :  { %v62_v22 = vpop.permute.xlu1 %61  ;;  %v60_v23 = vpop.permute.xlu0 %59 }
  0x8d   :  { %v172_v57 = vsel %vm170_vm3, %v167_v55, %v62_v22  ;;  %v171_v58 = vsel %vm170_vm3, %v166_v56, %v60_v23 }
  0x90   :  { %v66_v24 = vpop.permute.xlu1 %65  ;;  %v64_v25 = vpop.permute.xlu0 %63 }
  0x91   :  { %v173_v26 = vsel %vm170_vm3, %v168_v21, %v64_v25  ;;  %v174_v3 = vsel %vm170_vm3, %v169_v20, %v66_v24 }
  0x94   :  { %v74_v27 = vpop.permute.xlu1 %73  ;;  %v72_v28 = vpop.permute.xlu0 %71 }
  0x95   :  { %v177_v59 = vsel %vm175_vm4, %v172_v57, %v74_v27  ;;  %v176_v60 = vsel %vm175_vm4, %v171_v58, %v72_v28 }
  0x98   :  { %v78_v29 = vpop.permute.xlu1 %77  ;;  %v76_v30 = vpop.permute.xlu0 %75 }
  0x99   :  { %v178_v31 = vsel %vm175_vm4, %v173_v26, %v76_v30  ;;  %v179_v6 = vsel %vm175_vm4, %v174_v3, %v78_v29  ;;  %v797_v3 = vmov 1326507024  }
  0x9c   :  { %v86_v32 = vpop.permute.xlu1 %85  ;;  %v84_v33 = vpop.permute.xlu0 %83 }
  0x9d   :  { %v182_v61 = vsel %vm180_vm5, %v177_v59, %v86_v32  ;;  %v181_v62 = vsel %vm180_vm5, %v176_v60, %v84_v33 }
  0xa0   :  { %v90_v34 = vpop.permute.xlu1 %89  ;;  %v88_v35 = vpop.permute.xlu0 %87 }
  0xa1   :  { %v183_v36 = vsel %vm180_vm5, %v178_v31, %v88_v35  ;;  %v184_v10 = vsel %vm180_vm5, %v179_v6, %v90_v34  ;;  %v798_v6 = vmov 2102212464  }
  0xa4   :  { %v98_v37 = vpop.permute.xlu1 %97  ;;  %v96_v38 = vpop.permute.xlu0 %95 }
  0xa5   :  { %v187_v1 = vsel %vm185_vm6, %v182_v61, %v98_v37  ;;  %v186_v2 = vsel %vm185_vm6, %v181_v62, %v96_v38 }
  0xa8   :  { %v102_v39 = vpop.permute.xlu1 %101  ;;  %v100_v40 = vpop.permute.xlu0 %99 }
  0xa9   :  { %v189_v15 = vsel %vm185_vm6, %v184_v10, %v102_v39  ;;  %v188_v16 = vsel %vm185_vm6, %v183_v36, %v100_v40 }
  0xac   :  { %v110_v41 = vpop.permute.xlu1 %109  ;;  %v108_v42 = vpop.permute.xlu0 %107 }
  0xad   :  { %v192_v4 = vsel %vm190_vm7, %v187_v1, %v110_v41  ;;  %v191_v5 = vsel %vm190_vm7, %v186_v2, %v108_v42  ;;  %v796_v1 = vmov 920167782  }
  0xb0   :  { %v114_v43 = vpop.permute.xlu1 %113  ;;  %v112_v44 = vpop.permute.xlu0 %111 }
  0xb1   :  { %v194_v20 = vsel %vm190_vm7, %v189_v15, %v114_v43  ;;  %v193_v21 = vsel %vm190_vm7, %v188_v16, %v112_v44 }
  0xb4   :  { %v122_v45 = vpop.permute.xlu1 %121  ;;  %v120_v46 = vpop.permute.xlu0 %119 }
  0xb5   :  { %v197_v7 = vsel %vm195_vm8, %v192_v4, %v122_v45  ;;  %v196_v8 = vsel %vm195_vm8, %v191_v5, %v120_v46 }
  0xb8   :  { %v126_v47 = vpop.permute.xlu1 %125  ;;  %v124_v48 = vpop.permute.xlu0 %123 }
  0xb9   :  { %v199_v24 = vsel %vm195_vm8, %v194_v20, %v126_v47  ;;  %v198_v25 = vsel %vm195_vm8, %v193_v21, %v124_v48 }
  0xbc   :  { %v134_v53 = vpop.permute.xlu1 %133  ;;  %v132_v54 = vpop.permute.xlu0 %131 }
  0xbd   :  { %v202_v11 = vsel %vm200_vm9, %v197_v7, %v134_v53  ;;  %v201_v12 = vsel %vm200_vm9, %v196_v8, %v132_v54 }
  0xc0   :  { %v138_v63 = vpop.permute.xlu1 %137  ;;  %v136_v0 = vpop.permute.xlu0 %135 }
  0xc1   :  { %v204_v26 = vsel %vm200_vm9, %v199_v24, %v138_v63  ;;  %v203_v27 = vsel %vm200_vm9, %v198_v25, %v136_v0 }
  0xc4   :  { %v146_v13 = vpop.permute.xlu1 %145  ;;  %v144_v14 = vpop.permute.xlu0 %143 }
  0xc5   :  { %v207_v18 = vsel %vm205_vm10, %v202_v11, %v146_v13  ;;  %v206_v19 = vsel %vm205_vm10, %v201_v12, %v144_v14 }
  0xc6   :  { %v218_v22 = vmul.f32 %v689_v9, %v207_v18  ;;  %v217_v23 = vmul.f32 %v689_v9, %v206_v19 }
  0xc8   :  { %v945_v28 = vadd.f32 %v690_v17, %v218_v22  ;;  %v947_v29 = vadd.f32 %v690_v17, %v217_v23  ;;  %v150_v30 = vpop.permute.xlu1 %149  ;;  %v148_v31 = vpop.permute.xlu0 %147 }
  0xc9   :  { %v209_v32 = vsel %vm205_vm10, %v204_v26, %v150_v30  ;;  %v208_v33 = vsel %vm205_vm10, %v203_v27, %v148_v31 }
  0xca   :  { %v338_v34 = vand.u32 2139095040, %v945_v28  ;;  %v235_v35 = vand.u32 2139095040, %v947_v29  ;;  %v220_v36 = vmul.f32 %v689_v9, %v209_v32  ;;  %v219_v37 = vmul.f32 %v689_v9, %v208_v33 }
  0xcb   :  { %v335_v46 = vand.u32 2147483647, %v945_v28  ;;  %v232_v51 = vand.u32 2147483647, %v947_v29 }
  0xcc   :  { %v339_v38 = vshrl.u32 %v338_v34, 23  ;;  %v236_v39 = vshrl.u32 %v235_v35, 23  ;;  %v953_v40 = vadd.f32 %v690_v17, %v220_v36  ;;  %v955_v41 = vadd.f32 %v690_v17, %v219_v37 }
  0xcd   :  { %v342_v58 = vand.u32 8388607, %v335_v46  ;;  %v239_v60 = vand.u32 8388607, %v232_v51  ;;  %v799_v35 = vmov 683565275  }
  0xce   :  { %v695_v42 = vadd.s32 4294967169, %v339_v38  ;;  %v691_v43 = vadd.s32 4294967169, %v236_v39  ;;  %v544_v44 = vand.u32 2139095040, %v953_v40  ;;  %v441_v45 = vand.u32 2139095040, %v955_v41 }
  0xcf   :  { %v541_v0 = vand.u32 2147483647, %v953_v40  ;;  %v343_v5 = vor.u32 8388608, %v342_v58  ;;  %v240_v10 = vor.u32 8388608, %v239_v60  ;;  %v800_v37 = vmov 2475754826  }
  0xd0   :  { %v345_v47 = vadd.s32 1, %v695_v42  ;;  %v242_v48 = vadd.s32 1, %v691_v43  ;;  %v545_v49 = vshrl.u32 %v544_v44, 23  ;;  %v442_v50 = vshrl.u32 %v441_v45, 23 }
  0xd1   :  { %v985_v16 = vand.u32 8388607, %v541_v0  ;;  %v993_v22 = vshll.u32 %v343_v5, 8  ;;  %v1000_v26 = vshll.u32 %v240_v10, 8  ;;  %v801_v42 = vmov 2131351028  }
  0xd2   :  { %vm346_vm11 = vcmp.gt.s32.totalorder %v345_v47, 0  ;;  %vm243_vm12 = vcmp.gt.s32.totalorder %v242_v48, 0  ;;  %v703_v52 = vadd.s32 4294967169, %v545_v49  ;;  %v699_v53 = vadd.s32 4294967169, %v442_v50 }
  0xd3   :  { %v347_v54 = vsel %vm346_vm11, %v345_v47, 0  ;;  %v244_v55 = vsel %vm243_vm12, %v242_v48, 0  ;;  %v549_v30 = vor.u32 8388608, %v985_v16 }
  0xd4   :  { %v349_v56 = vand.u32 31, %v347_v54  ;;  %v961_v57 = vand.u32 31, %v244_v55  ;;  %v551_v59 = vadd.s32 1, %v703_v52  ;;  %v448_v62 = vadd.s32 1, %v699_v53 }
  0xd5   :  { %v348_v14 = vshrl.u32 %v347_v54, 5  ;;  %v981_v15 = vshrl.u32 %v244_v55, 5 }
  0xd6   :  { %v350_v61 = vsub.s32 32, %v349_v56  ;;  %v968_v63 = vsub.s32 32, %v961_v57  ;;  %vm552_vm13 = vcmp.gt.s32.totalorder %v551_v59, 0  ;;  %v361_v7 = vshll.u32 %v798_v6, %v349_v56 }
  0xd7   :  { %v364_v8 = vshll.u32 %v796_v1, %v349_v56  ;;  %v553_v9 = vsel %vm552_vm13, %v551_v59, 0  ;;  %vm449_vm14 = vcmp.gt.s32.totalorder %v448_v62, 0  ;;  %v258_v19 = vshll.u32 %v798_v6, %v961_v57 }
  0xd8   :  { %v362_v2 = vshrl.u32 %v796_v1, %v350_v61  ;;  %v365_v4 = vshrl.u32 %v797_v3, %v350_v61  ;;  %v259_v11 = vshrl.u32 %v796_v1, %v968_v63  ;;  %v262_v12 = vshrl.u32 %v797_v3, %v968_v63 }
  0xd9   :  { %v979_v13 = vand.u32 31, %v553_v9  ;;  %v261_v20 = vshll.u32 %v796_v1, %v961_v57  ;;  %v991_v21 = vsel %vm449_vm14, %v448_v62, 0  ;;  %vm370_vm15 = vcmp.lt.s32.totalorder %v348_v14, 4 }
  0xda   :  { %v363_v17 = vor.u32 %v362_v2, %v361_v7  ;;  %v366_v18 = vor.u32 %v365_v4, %v364_v8  ;;  %v995_v23 = vor.u32 %v259_v11, %v258_v19  ;;  %vm267_vm1 = vcmp.lt.s32.totalorder %v981_v15, 4 }
  0xdb   :  { %v263_v24 = vor.u32 %v262_v12, %v261_v20  ;;  %v998_v25 = vsub.s32 32, %v979_v13  ;;  %v1003_v27 = vshrl.u32 %v553_v9, 5  ;;  %v567_v33 = vshll.u32 %v798_v6, %v979_v13 }
  0xdc   :  { %v376_v31 = vsel %vm370_vm15, %v363_v17, 920167782  ;;  %v380_v32 = vsel %vm370_vm15, %v366_v18, 1326507024  ;;  %v1011_v34 = vand.u32 31, %v991_v21  ;;  %v352_v36 = vshll.u32 %v799_v35, %v349_v56 }
  0xdd   :  { %v353_v38 = vshrl.u32 %v800_v37, %v350_v61  ;;  %v355_v39 = vshll.u32 %v800_v37, %v349_v56  ;;  %v356_v43 = vshrl.u32 %v801_v42, %v350_v61  ;;  %v273_v44 = vsel %vm267_vm1, %v995_v23, 920167782 }
  0xde   :  { %v277_v45 = vsel %vm267_vm1, %v263_v24, 1326507024  ;;  %v568_v47 = vshrl.u32 %v796_v1, %v998_v25  ;;  %v1026_v48 = vshll.u32 %v796_v1, %v979_v13  ;;  %v358_v52 = vshll.u32 %v801_v42, %v349_v56 }
  0xdf   :  { %v354_v49 = vor.u32 %v353_v38, %v352_v36  ;;  %v357_v50 = vor.u32 %v356_v43, %v355_v39  ;;  %v359_v53 = vshrl.u32 %v798_v6, %v350_v61  ;;  %v1032_v54 = vshrl.u32 %v797_v3, %v998_v25 }
  0xe0   :  { %v351_v55 = vshrl.u32 %v799_v35, %v350_v61  ;;  %vm367_vm2 = vcmp.lt.s32.totalorder %v348_v14, 1  ;;  %vm369_vm3 = vcmp.lt.s32.totalorder %v348_v14, 3  ;;  %vm368_vm4 = vcmp.lt.s32.totalorder %v348_v14, 2 }
  0xe1   :  { %v360_v58 = vor.u32 %v359_v53, %v358_v52  ;;  %v375_v59 = vsel %vm367_vm2, %v354_v49, %v357_v50  ;;  %v381_v60 = vsel %vm369_vm3, %v363_v17, %v380_v32  ;;  %v249_v2 = vshll.u32 %v799_v35, %v961_v57 }
  0xe2   :  { %v371_v62 = vsel %vm367_vm2, %v351_v55, %v354_v49  ;;  %v250_v56 = vshrl.u32 %v800_v37, %v968_v63  ;;  %v252_v4 = vshll.u32 %v800_v37, %v961_v57  ;;  %v253_v8 = vshrl.u32 %v801_v42, %v968_v63 }
  0xe3   :  { %v372_v5 = vsel %vm370_vm15, %v360_v58, 2102212464  ;;  %v377_v7 = vsel %vm369_vm3, %v360_v58, %v376_v31  ;;  %v379_v61 = vsel %vm367_vm2, %v357_v50, %v360_v58  ;;  %v569_v24 = vor.u32 %v568_v47, %v567_v33 }
  0xe4   :  { %v373_v9 = vsel %vm369_vm3, %v357_v50, %v372_v5  ;;  %v378_v10 = vsel %vm368_vm4, %v375_v59, %v377_v7  ;;  %v382_v11 = vsel %vm368_vm4, %v379_v61, %v381_v60  ;;  %v251_v12 = vor.u32 %v250_v56, %v249_v2 }
  0xe5   :  { %v374_v17 = vsel %vm368_vm4, %v371_v62, %v373_v9  ;;  %v1045_v18 = vmul.u32.u64.low %v993_v22, %v382_v11  ;;  %v1046_v19 = vmul.u32.u64.high %v993_v22, %v382_v11, %v1045_v18  ;;  %v254_v20 = vor.u32 %v253_v8, %v252_v4 }
  0xe6   :  { %v1049_v32 = vmul.u32.u64.low %v993_v22, %v378_v10  ;;  %v1050_v14 = vmul.u32.u64.high %v993_v22, %v378_v10, %v1049_v32  ;;  %v248_v31 = vshrl.u32 %v799_v35, %v968_v63  ;;  %v572_v36 = vor.u32 %v1032_v54, %v1026_v48 }
  0xe7   :  { %v255_v38 = vshll.u32 %v801_v42, %v961_v57  ;;  %v256_v39 = vshrl.u32 %v798_v6, %v968_v63  ;;  %vm264_vm5 = vcmp.lt.s32.totalorder %v981_v15, 1  ;;  %v390_v33 = vmul.u32 %v993_v22, %v374_v17 }
  0xe8   :  { %vm265_vm6 = vcmp.lt.s32.totalorder %v981_v15, 2  ;;  %vm266_vm7 = vcmp.lt.s32.totalorder %v981_v15, 3  ;;  %v268_v43 = vsel %vm264_vm5, %v248_v31, %v251_v12  ;;  %vm392_vm8 = vc.u32 %v1046_v19, %v1049_v32 }
  0xe9   :  { %v257_v47 = vor.u32 %v256_v39, %v255_v38  ;;  %v272_v57 = vsel %vm264_vm5, %v251_v12, %v254_v20  ;;  %v278_v63 = vsel %vm266_vm7, %v995_v23, %v277_v45  ;;  %v393_v48 = vadd.s32 1, %v1050_v14 }
  0xea   :  { %v558_v22 = vshll.u32 %v799_v35, %v979_v13  ;;  %v559_v49 = vshrl.u32 %v800_v37, %v998_v25  ;;  %v561_v50 = vshll.u32 %v800_v37, %v979_v13  ;;  %v562_v23 = vshrl.u32 %v801_v42, %v998_v25 }
  0xeb   :  { %v269_v52 = vsel %vm267_vm1, %v257_v47, 2102212464  ;;  %v274_v53 = vsel %vm266_vm7, %v257_v47, %v273_v44  ;;  %v276_v54 = vsel %vm264_vm5, %v254_v20, %v257_v47  ;;  %v394_v45 = vsel %vm392_vm8, %v393_v48, %v1050_v14 }
  0xec   :  { %v270_v55 = vsel %vm266_vm7, %v254_v20, %v269_v52  ;;  %v275_v58 = vsel %vm265_vm6, %v272_v57, %v274_v53  ;;  %v279_v59 = vsel %vm265_vm6, %v276_v54, %v278_v63  ;;  %v395_v60 = vadd.s32 %v394_v45, %v390_v33 }
  0xed   :  { %v271_v62 = vsel %vm265_vm6, %v268_v43, %v270_v55  ;;  %v1093_v44 = vmul.u32.u64.low %v1000_v26, %v279_v59  ;;  %v1094_v2 = vmul.u32.u64.high %v1000_v26, %v279_v59, %v1093_v44  ;;  %vm576_vm9 = vcmp.lt.s32.totalorder %v1003_v27, 4 }
  0xee   :  { %v1098_v56 = vmul.u32.u64.low %v1000_v26, %v275_v58  ;;  %v1099_v4 = vmul.u32.u64.high %v1000_v26, %v275_v58, %v1098_v56  ;;  %v560_v5 = vor.u32 %v559_v49, %v558_v22  ;;  %v396_v7 = vadd.s32 536870912, %v395_v60 }
  0xef   :  { %v563_v61 = vor.u32 %v562_v23, %v561_v50  ;;  %v564_v8 = vshll.u32 %v801_v42, %v979_v13  ;;  %v565_v15 = vshrl.u32 %v798_v6, %v998_v25  ;;  %v582_v9 = vsel %vm576_vm9, %v569_v24, 920167782 }
  0xf0   :  { %v586_v10 = vsel %vm576_vm9, %v572_v36, 1326507024  ;;  %v287_v11 = vmul.u32 %v1000_v26, %v271_v62  ;;  %v557_v12 = vshrl.u32 %v799_v35, %v998_v25  ;;  %v1113_v17 = vshrl.u32 %v396_v7, 30 }
  0xf1   :  { %vm289_vm10 = vc.u32 %v1094_v2, %v1098_v56  ;;  %v566_v13 = vor.u32 %v565_v15, %v564_v8  ;;  %vm573_vm11 = vcmp.lt.s32.totalorder %v1003_v27, 1  ;;  %v290_v18 = vadd.s32 1, %v1099_v4 }
  0xf2   :  { %vm574_vm12 = vcmp.lt.s32.totalorder %v1003_v27, 2  ;;  %vm575_vm13 = vcmp.lt.s32.totalorder %v1003_v27, 3  ;;  %v581_v26 = vsel %vm573_vm11, %v560_v5, %v563_v61  ;;  %v398_v20 = vshll.u32 %v1113_v17, 30 }
  0xf3   :  { %v578_v25 = vsel %vm576_vm9, %v566_v13, 2102212464  ;;  %v583_v14 = vsel %vm575_vm13, %v566_v13, %v582_v9  ;;  %v587_v31 = vsel %vm575_vm13, %v569_v24, %v586_v10  ;;  %v291_v36 = vsel %vm289_vm10, %v290_v18, %v1099_v4 }
  0xf4   :  { %v584_v38 = vsel %vm574_vm12, %v581_v26, %v583_v14  ;;  %v585_v39 = vsel %vm573_vm11, %v563_v61, %v566_v13  ;;  %v589_v33 = vshll.u32 %v549_v30, 8  ;;  %v1134_v43 = vsub.s32 32, %v1011_v34 }
  0xf5   :  { %v399_v47 = vsub.s32 %v395_v60, %v398_v20  ;;  %v292_v57 = vadd.s32 %v291_v36, %v287_v11  ;;  %v577_v63 = vsel %vm573_vm11, %v557_v12, %v560_v5  ;;  %v579_v24 = vsel %vm575_vm13, %v563_v61, %v578_v25 }
  0xf6   :  { %v588_v48 = vsel %vm574_vm12, %v585_v39, %v587_v31  ;;  %v1140_v22 = vmul.u32.u64.low %v589_v33, %v584_v38  ;;  %v1141_v49 = vmul.u32.u64.high %v589_v33, %v584_v38, %v1140_v22  ;;  %v580_v54 = vsel %vm574_vm12, %v577_v63, %v579_v24 }
  0xf7   :  { %v401_v50 = vsub.s32 0, %v399_v47  ;;  %v293_v52 = vadd.s32 536870912, %v292_v57  ;;  %v1144_v16 = vmul.u32.u64.low %v589_v33, %v588_v48  ;;  %v1145_v30 = vmul.u32.u64.high %v589_v33, %v588_v48, %v1144_v16 }
  0xf8   :  { %v465_v23 = vshrl.u32 %v796_v1, %v1134_v43  ;;  %v599_v55 = vadd.s32 1, %v1141_v49  ;;  %v1155_v58 = vshrl.u32 %v991_v21, 5  ;;  %v464_v60 = vshll.u32 %v798_v6, %v1011_v34 }
  0xf9   :  { %v696_v53 = vmin.u32 %v401_v50, %v399_v47  ;;  %v1151_v45 = vshrl.u32 %v293_v52, 30  ;;  %v596_v44 = vmul.u32 %v589_v33, %v580_v54  ;;  %vm598_vm14 = vc.u32 %v1145_v30, %v1140_v22 }
  0xfa   :  { %v468_v27 = vshrl.u32 %v797_v3, %v1134_v43  ;;  %v600_v5 = vsel %vm598_vm14, %v599_v55, %v1141_v49  ;;  %v1165_v7 = vor.u32 %v465_v23, %v464_v60  ;;  %v467_v8 = vshll.u32 %v796_v1, %v1011_v34 }
  0xfb   :  { %v403_v59 = vclz %v696_v53  ;;  %v295_v62 = vshll.u32 %v1151_v45, 30  ;;  %v601_v61 = vadd.s32 %v600_v5, %v596_v44  ;;  %vm473_vm15 = vcmp.lt.s32.totalorder %v1155_v58, 4 }
  0xfc   :  { %v438_v3 = vand.u32 2147483647, %v955_v41  ;;  %v469_v11 = vor.u32 %v468_v27, %v467_v8  ;;  %v391_v12 = vadd.s32 %v1049_v32, %v1046_v19  ;;  %v479_v26 = vsel %vm473_vm15, %v1165_v7, 920167782 }
  0xfd   :  { %v697_v4 = vadd.s32 4294967294, %v403_v59  ;;  %v1167_v21 = vsub.s32 %v292_v57, %v295_v62  ;;  %v602_v10 = vadd.s32 536870912, %v601_v61  ;;  %v456_v20 = vshrl.u32 %v800_v37, %v1134_v43 }
  0xfe   :  { %v459_v25 = vshrl.u32 %v801_v42, %v1134_v43  ;;  %v445_v32 = vand.u32 8388607, %v438_v3  ;;  %v455_v39 = vshll.u32 %v799_v35, %v1011_v34  ;;  %v462_v33 = vshrl.u32 %v798_v6, %v1134_v43 }
  0xff   :  { %vm698_vm1 = vcmp.lt.s32.totalorder %v697_v4, 0  ;;  %v298_v9 = vsub.s32 0, %v1167_v21  ;;  %v1184_v38 = vshrl.u32 %v602_v10, 30  ;;  %v483_v48 = vsel %vm473_vm15, %v469_v11, 1326507024 }
 0x100   :  { %v406_v15 = vsel %vm698_vm1, 0, %v697_v4  ;;  %vm337_vm2 = vcmp.lt.s32.totalorder %v945_v28, 0  ;;  %v288_v49 = vadd.s32 %v1098_v56, %v1094_v2  ;;  %v461_v52 = vshll.u32 %v801_v42, %v1011_v34 }
 0x101   :  { %v407_v13 = vsub.s32 32, %v406_v15  ;;  %v411_v18 = vsub.s32 4294967266, %v406_v15  ;;  %v692_v1 = vmin.u32 %v298_v9, %v1167_v21  ;;  %v408_v14 = vshll.u32 %v399_v47, %v406_v15 }
 0x102   :  { %v604_v24 = vshll.u32 %v1184_v38, 30  ;;  %v458_v47 = vshll.u32 %v800_v37, %v1011_v34  ;;  %vm1204_vm3 = vcmp.le.f32.partialorder %v335_v46, 0.7853982  ;;  %v457_v53 = vor.u32 %v456_v20, %v455_v39 }
 0x103   :  { %v409_v31 = vshrl.u32 %v391_v12, %v407_v13  ;;  %v412_v36 = vadd.s32 127, %v411_v18  ;;  %v300_v19 = vclz %v692_v1  ;;  %v421_v23 = vsub.s32 4, %v1113_v17 }
 0x104   :  { %v605_v37 = vsub.s32 %v601_v61, %v604_v24  ;;  %v460_v54 = vor.u32 %v459_v25, %v458_v47  ;;  %v446_v55 = vor.u32 8388608, %v445_v32  ;;  %v463_v59 = vor.u32 %v462_v33, %v461_v52 }
 0x105   :  { %v410_v57 = vor.u32 %v409_v31, %v408_v14  ;;  %v413_v63 = vshll.u32 %v412_v36, 23  ;;  %v693_v50 = vadd.s32 4294967294, %v300_v19  ;;  %vm470_vm5 = vcmp.lt.s32.totalorder %v1155_v58, 1 }
 0x106   :  { %v607_v62 = vsub.s32 0, %v605_v37  ;;  %vm471_vm6 = vcmp.lt.s32.totalorder %v1155_v58, 2  ;;  %vm472_vm7 = vcmp.lt.s32.totalorder %v1155_v58, 3  ;;  %v478_v27 = vsel %vm470_vm5, %v457_v53, %v460_v54 }
 0x107   :  { %v414_v16 = vor.u32 4788187, %v413_v63  ;;  %vm694_vm4 = vcmp.lt.s32.totalorder %v693_v50, 0  ;;  %v417_v56 = vcvt.s32.f32 %v410_v57  ;;  %v480_v8 = vsel %vm472_vm7, %v463_v59, %v479_v26 }
 0x108   :  { %v303_v60 = vsel %vm694_vm4, 0, %v693_v50  ;;  %v704_v44 = vmin.u32 %v607_v62, %v605_v37  ;;  %v482_v10 = vsel %vm470_vm5, %v460_v54, %v463_v59  ;;  %v484_v11 = vsel %vm472_vm7, %v1165_v7, %v483_v48 }
 0x109   :  { %v415_v2 = vand.u32 2147483647, %v414_v16  ;;  %v304_v34 = vsub.s32 32, %v303_v60  ;;  %v308_v42 = vsub.s32 4294967266, %v303_v60  ;;  %v305_v4 = vshll.u32 %v1167_v21, %v303_v60 }
 0x10a   :  { %v609_v9 = vclz %v704_v44  ;;  %v454_v18 = vshrl.u32 %v799_v35, %v1134_v43  ;;  %v485_v21 = vsel %vm471_vm6, %v482_v10, %v484_v11  ;;  %v597_v1 = vadd.s32 %v1140_v22, %v1145_v30 }
 0x10b   :  { %v418_v46 = vmul.f32 %v417_v56, %v415_v2  ;;  %v306_v5 = vshrl.u32 %v288_v49, %v304_v34  ;;  %v309_v61 = vadd.s32 127, %v308_v42  ;;  %v486_v25 = vshll.u32 %v446_v55, 8 }
 0x10c   :  { %v705_v20 = vadd.s32 4294967294, %v609_v9  ;;  %v475_v31 = vsel %vm473_vm15, %v463_v59, 2102212464  ;;  %v481_v35 = vsel %vm471_vm6, %v478_v27, %v480_v8  ;;  %v474_v33 = vsel %vm470_vm5, %v454_v18, %v457_v53 }
 0x10d   :  { %v419_v15 = vxor.u32 2147483648, %v418_v46  ;;  %v307_v12 = vor.u32 %v306_v5, %v305_v4  ;;  %v310_v13 = vshll.u32 %v309_v61, 23  ;;  %v476_v57 = vsel %vm472_vm7, %v460_v54, %v475_v31 }
 0x10e   :  { %vm706_vm8 = vcmp.lt.s32.totalorder %v705_v20, 0  ;;  %v1237_v43 = vmul.u32.u64.low %v486_v25, %v485_v21  ;;  %v1238_v36 = vmul.u32.u64.high %v486_v25, %v485_v21, %v1237_v43  ;;  %v422_v52 = vsel %vm337_vm2, %v421_v23, %v1113_v17 }
 0x10f   :  { %v420_v26 = vsel %vm337_vm2, %v419_v15, %v418_v46  ;;  %v311_v14 = vor.u32 4788187, %v310_v13  ;;  %v314_v30 = vcvt.s32.f32 %v307_v12  ;;  %v612_v19 = vsel %vm706_vm8, 0, %v705_v20 }
 0x110   :  { %v423_v7 = vsel %vm1204_vm3, %v945_v28, %v420_v26  ;;  %v613_v32 = vsub.s32 32, %v612_v19  ;;  %v617_v39 = vsub.s32 4294967266, %v612_v19  ;;  %v614_v48 = vshll.u32 %v605_v37, %v612_v19 }
 0x111   :  { %743 = vcosq.f32 %v423_v7  ;;  %v312_v22 = vand.u32 2147483647, %v311_v14  ;;  %v1244_v24 = vmul.u32.u64.low %v486_v25, %v481_v35  ;;  %v1245_v47 = vmul.u32.u64.high %v486_v25, %v481_v35, %v1244_v24 }
 0x112   :  { %745 = vsinq.f32 %v423_v7  ;;  %v615_v49 = vshrl.u32 %v597_v1, %v613_v32  ;;  %v618_v50 = vadd.s32 127, %v617_v39  ;;  %v477_v55 = vsel %vm471_vm6, %v474_v33, %v476_v57 }
 0x113   :  { %v315_v63 = vmul.f32 %v314_v30, %v312_v22  ;;  %vm234_vm9 = vcmp.lt.s32.totalorder %v947_v29, 0  ;;  %vm495_vm10 = vc.u32 %v1238_v36, %v1244_v24  ;;  %vm1258_vm11 = vcmp.le.f32.partialorder %v232_v51, 0.7853982 }
 0x114   :  { %v616_v53 = vor.u32 %v615_v49, %v614_v48  ;;  %v619_v54 = vshll.u32 %v618_v50, 23  ;;  %v496_v23 = vadd.s32 1, %v1245_v47  ;;  %v424_v58 = vsel %vm1204_vm3, 0, %v422_v52 }
 0x115   :  { %v316_v16 = vxor.u32 2147483648, %v315_v63  ;;  %v493_v56 = vmul.u32 %v486_v25, %v477_v55  ;;  %v318_v60 = vsub.s32 4, %v1151_v45  ;;  %v428_v46 = vand.u32 3, %v424_v58 }
 0x116   :  { %v620_v2 = vor.u32 4788187, %v619_v54  ;;  %v497_v51 = vsel %vm495_vm10, %v496_v23, %v1245_v47  ;;  %v623_v34 = vcvt.s32.f32 %v616_v53  ;;  %vm1279_vm13 = vcmp.le.f32.partialorder %v541_v0, 0.7853982 }
 0x117   :  { %v317_v17 = vsel %vm234_vm9, %v316_v16, %v315_v63  ;;  %v498_v42 = vadd.s32 %v497_v51, %v493_v56  ;;  %v319_v61 = vsel %vm234_vm9, %v318_v60, %v1151_v45  ;;  %vm433_vm12 = vcmp.eq.s32.totalorder %v428_v46, 2 }
 0x118   :  { %v320_v59 = vsel %vm1258_vm11, %v947_v29, %v317_v17  ;;  %v621_v62 = vand.u32 2147483647, %v620_v2  ;;  %vm543_vm14 = vcmp.lt.s32.totalorder %v953_v40, 0  ;;  %vm430_vm15 = vcmp.eq.s32.totalorder %v428_v46, 0 }
 0x119   :  { %747 = vcosq.f32 %v320_v59  ;;  %v499_v27 = vadd.s32 536870912, %v498_v42  ;;  %vm429_vm1 = vcmp.lt.s32.totalorder %v428_v46, 2  ;;  %v321_v18 = vsel %vm1258_vm11, 0, %v319_v61 }
 0x11a   :  { %749 = vsinq.f32 %v320_v59  ;;  %v624_v44 = vmul.f32 %v623_v34, %v621_v62  ;;  %vm427_vm2 = vweird.f32 %v945_v28  ;;  %v627_v20 = vsub.s32 4, %v1184_v38 }
 0x11b   :  { %v1275_v15 = vshrl.u32 %v499_v27, 30  ;;  %v325_v7 = vand.u32 3, %v321_v18  ;;  %vm324_vm6 = vweird.f32 %v947_v29  ;;  %vm633_vm11 = vweird.f32 %v953_v40  ;;  %v759_v18 = vld [vmem:[%s1337_s0 + $0x8] sm:$0xff] }
 0x11c   :  { %v625_v8 = vxor.u32 2147483648, %v624_v44  ;;  %v628_v28 = vsel %vm543_vm14, %v627_v20, %v1184_v38  ;;  %v494_v38 = vadd.s32 %v1244_v24, %v1238_v36  ;;  %v761_v20 = vld [vmem:[%s1337_s0 + $0x18] sm:$0xff] }
 0x11d   :  { %v501_v45 = vshll.u32 %v1275_v15, 30  ;;  %vm330_vm3 = vcmp.eq.s32.totalorder %v325_v7, 2  ;;  %vm327_vm4 = vcmp.eq.s32.totalorder %v325_v7, 0  ;;  %vm326_vm5 = vcmp.lt.s32.totalorder %v325_v7, 2 }
 0x11e   :  { %v744_v6 = vpop.eup %743  ;;  %v626_v12 = vsel %vm543_vm14, %v625_v8, %v624_v44  ;;  %v630_v33 = vsel %vm1279_vm13, 0, %v628_v28 }
 0x11f   :  { %v746_v4 = vpop.eup %745  ;;  %v434_v5 = vxor.u32 2147483648, %v744_v6  ;;  %v629_v0 = vsel %vm1279_vm13, %v953_v40, %v626_v12  ;;  %v502_v26 = vsub.s32 %v498_v42, %v501_v45  ;;  %v634_v49 = vand.u32 3, %v630_v33 }
 0x120   :  { %v431_v9 = vxor.u32 2147483648, %v746_v4  ;;  %751 = vcosq.f32 %v629_v0  ;;  %vm439_vm13 = vcmp.le.f32.partialorder %v438_v3, 0.7853982  ;;  %v524_v40 = vsub.s32 4, %v1275_v15 }
 0x121   :  { %v435_v11 = vsel %vm433_vm12, %v434_v5, %v746_v4  ;;  %753 = vsinq.f32 %v629_v0  ;;  %v504_v14 = vsub.s32 0, %v502_v26  ;;  %vm639_vm8 = vcmp.eq.s32.totalorder %v634_v49, 2 }
 0x122   :  { %v432_v13 = vsel %vm430_vm15, %v744_v6, %v431_v9  ;;  %vm636_vm9 = vcmp.eq.s32.totalorder %v634_v49, 0  ;;  %vm635_vm10 = vcmp.lt.s32.totalorder %v634_v49, 2  ;;  %vm440_vm12 = vcmp.lt.s32.totalorder %v955_v41, 0 }
 0x123   :  { %v436_v21 = vsel %vm429_vm1, %v432_v13, %v435_v11  ;;  %v700_v35 = vmin.u32 %v504_v14, %v502_v26  ;;  %v525_v6 = vsel %vm440_vm12, %v524_v40, %v1275_v15  ;;  %v762_v14 = vld [vmem:[%s1337_s0 + $0x10] sm:$0xff] }
 0x124   :  { %v437_v1 = vsel %vm427_vm2, nan, %v436_v21  ;;  %v527_v4 = vsel %vm439_vm13, 0, %v525_v6  ;;  %vm530_vm2 = vweird.f32 %v955_v41 }
 0x125   :  { %v645_v25 = vmul.f32 1.4142135, %v437_v1  ;;  %v506_v19 = vclz %v700_v35  ;;  %v531_v5 = vand.u32 3, %v527_v4 }
 0x126   :  { %v748_v31 = vpop.eup %747 }
 0x127   :  { %654 = vrot.lane.b32.xlu1 %v645_v25, %s785_s16  ;;  %v750_v43 = vpop.eup %749  ;;  %v331_v22 = vxor.u32 2147483648, %v748_v31  ;;  %v701_v57 = vadd.s32 4294967294, %v506_v19  ;;  %vm536_vm14 = vcmp.eq.s32.totalorder %v531_v5, 2  ;;  %vm533_vm15 = vcmp.eq.s32.totalorder %v531_v5, 0 }
 0x128   :  { %v328_v30 = vxor.u32 2147483648, %v750_v43  ;;  %vm532_vm1 = vcmp.lt.s32.totalorder %v531_v5, 2 }
 0x129   :  { %v332_v32 = vsel %vm330_vm3, %v331_v22, %v750_v43  ;;  %vm702_vm7 = vcmp.lt.s32.totalorder %v701_v57, 0  ;;  %vm668_vm3 = vcmask 318464  }
 0x12a   :  { %v329_v39 = vsel %vm327_vm4, %v748_v31, %v328_v30  ;;  %v509_v50 = vsel %vm702_vm7, 0, %v701_v57 }
 0x12b   :  { %v333_v63 = vsel %vm326_vm5, %v329_v39, %v332_v32  ;;  %v510_v52 = vsub.s32 32, %v509_v50  ;;  %v514_v16 = vsub.s32 4294967266, %v509_v50  ;;  %v511_v37 = vshll.u32 %v502_v26, %v509_v50 }
 0x12c   :  { %v334_v47 = vsel %vm324_vm6, nan, %v333_v63 }
 0x12d   :  { %v644_v48 = vmul.f32 1.4142135, %v334_v47  ;;  %v752_v55 = vpop.eup %751  ;;  %v512_v17 = vshrl.u32 %v494_v38, %v510_v52  ;;  %v515_v23 = vadd.s32 127, %v514_v16 }
 0x12e   :  { %v754_v53 = vpop.eup %753  ;;  %v640_v54 = vxor.u32 2147483648, %v752_v55 }
 0x12f   :  { %652 = vrot.lane.b32.xlu0 %v644_v48, %s785_s16  ;;  %v637_v29 = vxor.u32 2147483648, %v754_v53  ;;  %v513_v59 = vor.u32 %v512_v17, %v511_v37  ;;  %v516_v2 = vshll.u32 %v515_v23, 23 }
 0x130   :  { %v641_v58 = vsel %vm639_vm8, %v640_v54, %v754_v53 }
 0x131   :  { %v638_v56 = vsel %vm636_vm9, %v752_v55, %v637_v29  ;;  %v517_v24 = vor.u32 4788187, %v516_v2  ;;  %v520_v34 = vcvt.s32.f32 %v513_v59 }
 0x132   :  { %v642_v36 = vsel %vm635_vm10, %v638_v56, %v641_v58 }
 0x133   :  { %v643_v60 = vsel %vm633_vm11, nan, %v642_v36  ;;  %v518_v62 = vand.u32 2147483647, %v517_v24 }
 0x134   :  { %v647_v51 = vmul.f32 1.4142135, %v643_v60 }
 0x135   :  { %v521_v42 = vmul.f32 %v520_v34, %v518_v62 }
 0x136   :  { %658 = vrot.lane.b32.xlu1 %v647_v51, %s785_s16 }
 0x137   :  { %v522_v46 = vxor.u32 2147483648, %v521_v42 }
 0x139   :  { %v523_v44 = vsel %vm440_vm12, %v522_v46, %v521_v42 }
 0x13a   :  { %v526_v27 = vsel %vm439_vm13, %v955_v41, %v523_v44  ;;  %v760_v41 = vld [vmem:[%s1337_s0] sm:$0xff] }
 0x13b   :  { %755 = vcosq.f32 %v526_v27 }
 0x13c   :  { %757 = vsinq.f32 %v526_v27 }
 0x148   :  { %v756_v61 = vpop.eup %755 }
 0x149   :  { %v758_v8 = vpop.eup %757  ;;  %v537_v9 = vxor.u32 2147483648, %v756_v61 }
 0x14a   :  { %v534_v10 = vxor.u32 2147483648, %v758_v8 }
 0x14b   :  { %v538_v11 = vsel %vm536_vm14, %v537_v9, %v758_v8 }
 0x14c   :  { %v535_v3 = vsel %vm533_vm15, %v756_v61, %v534_v10 }
 0x14d   :  { %v539_v12 = vsel %vm532_vm1, %v535_v3, %v538_v11 }
 0x14e   :  { %v540_v45 = vsel %vm530_vm2, nan, %v539_v12 }
 0x14f   :  { %v646_v13 = vmul.f32 1.4142135, %v540_v45 }
 0x151   :  { %656 = vrot.lane.b32.xlu0 %v646_v13, %s785_s16  ;;  %s763_s16 = scalar_lea.vmem %s679_s13, 512 }
 0x152   :  { %p764_p0 = scmp.ne.s32.totalorder %s679_s13, %s763_s16  ;;  %p769_p2 = scmp.lt.s32.totalorder %s763_s16, %s763_s16 }
 0x154   :  { %p770_p3 = por %p769_p2, %p768_p1 }
 0x156   :  { %p771_p4 = pnand %p770_p3, %p764_p0 }
 0x199   :  { %v655_v15 = vpop.permute.xlu1 %654 }
 0x19a   :  { %v665_v0 = vsel %vm155_vm0, %v759_v18, %v655_v15 }
 0x19b   :  { %670 = vst.msk [vmem:[#allocation2 + $0x8] sm:$0xff] %vm668_vm3, %v665_v0 }
 0x1a1   :  { %v653_v21 = vpop.permute.xlu0 %652 }
 0x1a2   :  { %v664_v26 = vsel %vm155_vm0, %v760_v41, %v653_v21 }
 0x1a3   :  { %669 = vst.msk [vmem:[#allocation2] sm:$0xff] %vm668_vm3, %v664_v26 }
 0x1a8   :  { %v659_v1 = vpop.permute.xlu1 %658 }
 0x1a9   :  { %v667_v25 = vsel %vm155_vm0, %v761_v20, %v659_v1 }
 0x1aa   :  { %672 = vst.msk [vmem:[#allocation2 + $0x18] sm:$0xff] %vm668_vm3, %v667_v25 }
 0x1c3   :  { %v657_v7 = vpop.permute.xlu0 %656 }
 0x1c4   :  { %v666_v31 = vsel %vm155_vm0, %v762_v14, %v657_v7 }
 0x1c5   :  { %671 = vst.msk [vmem:[#allocation2 + $0x10] sm:$0xff] %vm668_vm3, %v666_v31 }
 0x1c6   :  { %774 = shalt.err (!%p771_p4)
}
 0x1c7   :  { %s803_s17 = smov 128   ;;  %s804_s18 = smov 8  }
 0x1c8   :  { %684 = dma.vmem_to_hbm [thread:$0]  %s679_s13, 512, %s1340_s3, [#allocation3], %s803_s17, %s803_s17, %s804_s18  }
 0x1c9   :  { %783 = dma.done.wait [#allocation3], 512  }
 0x1ca   :  { %784 = vsyncadd [#allocation3], 4294966784 }
 0x1cb   :  { %688 = vsyncpa [#allocation3], 1 }

</bundles_post_ra>
